<compile_context>
chip_gen: v7x
topology: tpu7x:2x2x1
jax: 0.10.0
libtpu: 0.0.40
codegen_flags: <defaults>
</compile_context>

<pallas_src>
import functools

import jax
import jax.numpy as jnp
from jax.experimental import pallas as pl
from jax.experimental.pallas import tpu as pltpu


FILTER_SIZES = (2, 3, 4)
LANE = 128


def _round_up(x, m):
    return ((x + m - 1) // m) * m


def _vmem_capacity_bytes():
    try:
        return int(pltpu.get_tpu_info().vmem_capacity_bytes)
    except Exception:
        return 128 * 1024 * 1024           # assume v5e/v6e if query unavailable


_VMEM_CAP = _vmem_capacity_bytes()
# Generation-aware scoped-VMEM request: 64 MiB on 128 MiB chips (v5e/v6e),
# ~38 MiB on 64 MiB chips (v7x).
_VMEM_LIMIT = min(64 * 1024 * 1024, int(0.6 * _VMEM_CAP))
# Conv batch tile: halve it where VMEM is 64 MiB (v7x).
_CONV_TB_DEFAULT = 4 if _VMEM_CAP <= 96 * 1024 * 1024 else 8


@functools.lru_cache(maxsize=None)
def _buffered_supported():
    """Probe whether pipeline_mode=pl.Buffered(1) lowers cleanly on this JAX."""
    if not hasattr(pl, "Buffered"):
        return False
    try:
        def k(x_ref, o_ref):
            o_ref[...] = x_ref[...] + 1.0
        spec = pl.BlockSpec((8, LANE), lambda i: (0, 0),
                            pipeline_mode=pl.Buffered(1))
        f = pl.pallas_call(
            k, out_shape=jax.ShapeDtypeStruct((8, LANE), jnp.float32),
            grid=(1,), in_specs=[spec],
            out_specs=pl.BlockSpec((8, LANE), lambda i: (0, 0)))
        jax.block_until_ready(f(jnp.zeros((8, LANE), jnp.float32)))
        return True
    except Exception:
        return False


def _resident(block_shape, index_map):
    """BlockSpec for operands whose block index never changes (weights/biases).

    Single-buffered when supported: the second pipeline buffer is pure VMEM
    waste for a constant index_map.
    """
    if _buffered_supported():
        try:
            return pl.BlockSpec(block_shape, index_map,
                                pipeline_mode=pl.Buffered(1))
        except Exception:
            pass
    return pl.BlockSpec(block_shape, index_map)


# ----------------------------------------------------------------------------
# Tile pickers
# ----------------------------------------------------------------------------
def _pick_row_tile(m, desired=2048):
    # 16-row alignment covers both f32 (8,128) and bf16-packed (16,128) tiles.
    tm = min(desired, _round_up(m, 16))
    if _round_up(m, tm) // tm < 2 and m > 16:
        tm = _round_up(pl.cdiv(m, 2), 16)     # >=2 grid steps (v7x megacore)
    return tm, _round_up(m, tm)


def _pick_conv_batch_tile(B, S, desired):
    tb = max(1, min(desired, B))
    if B // tb < 2 and B > 1:                  # >=2 grid steps (v7x megacore)
        tb = max(1, B // 2)
    while B % tb != 0 and tb > 1:              # divide B -> skip wrapper pad pass
        tb -= 1
    if (tb * S) % 8 != 0 and tb != B:          # keep activation blocks 8-aligned
        tb = B
    return tb, _round_up(B, tb)


# ----------------------------------------------------------------------------
# MLP head:  relu(x @ W1 + b1) @ W2 + b2   (dropout is identity in eval mode)
# ----------------------------------------------------------------------------
def _mlp_head_kernel(x_ref, w1_ref, b1_ref, w2_ref, b2_ref, o_ref):
    x = x_ref[...].astype(jnp.bfloat16)                       # f32 -> bf16 in-kernel
    h = jnp.dot(x, w1_ref[...], preferred_element_type=jnp.float32)
    h = jnp.maximum(h + b1_ref[...], 0.0).astype(jnp.bfloat16)
    o = jnp.dot(h, w2_ref[...], preferred_element_type=jnp.float32) + b2_ref[...]
    o_ref[...] = o.astype(o_ref.dtype)                        # bf16 lane-dense store


def mlp_head(x2d, w1, b1, w2, b2, *, tm=2048):
    """x2d: (M, H) f32; w1: (H, H); w2: (H, n_out) -> (M, n_out) f32."""
    m, h = x2d.shape
    n_out = w2.shape[1]
    n_pad = _round_up(n_out, LANE)             # lane-dense output (pad 8/2 -> 128)

    tm, m_pad = _pick_row_tile(m, tm)
    x_in = x2d
    if m_pad != m:                             # rare: only when tm does not divide M
        x_in = jnp.pad(x_in, ((0, m_pad - m), (0, 0)))

    w1b = w1.astype(jnp.bfloat16)              # tiny one-time weight casts
    w2b = jnp.pad(w2, ((0, 0), (0, n_pad - n_out))).astype(jnp.bfloat16)
    b2p = jnp.pad(b2, (0, n_pad - n_out))

    out = pl.pallas_call(
        _mlp_head_kernel,
        out_shape=jax.ShapeDtypeStruct((m_pad, n_pad), jnp.bfloat16),
        grid=(m_pad // tm,),
        in_specs=[
            pl.BlockSpec((tm, h), lambda i: (i, 0)),          # f32 row-tiled activations
            _resident((h, h), lambda i: (0, 0)),              # W1 (bf16, resident)
            _resident((1, h), lambda i: (0, 0)),              # b1
            _resident((h, n_pad), lambda i: (0, 0)),          # W2 (bf16, padded)
            _resident((1, n_pad), lambda i: (0, 0)),          # b2 (padded)
        ],
        out_specs=pl.BlockSpec((tm, n_pad), lambda i: (i, 0)),
        compiler_params=pltpu.CompilerParams(
            dimension_semantics=("parallel",),
            vmem_limit_bytes=_VMEM_LIMIT),
    )(x_in, w1b, b1.reshape(1, -1), w2b, b2p.reshape(1, -1))
    # Only the tiny real slice is upcast to f32 for the loss.
    return out[:m, :n_out].astype(jnp.float32)


# ----------------------------------------------------------------------------
# Fused conv_and_pool (all filter sizes) + fc:
#   for k in (2,3,4): relu(Conv2d(k, H)(x) + b) -> max over sequence
#   concat -> fc -> logits (2 classes, padded to 128 lanes)
# ----------------------------------------------------------------------------
def _conv_pool_fc_kernel(x_ref, w_ref, cb_ref, fcw_ref, fcb_ref, o_ref, acc_ref, *,
                         filter_sizes, seq_len, tb, n_filters):
    s = seq_len
    n = tb * s
    x = x_ref[...].astype(jnp.bfloat16)                       # (TB*S, H), read once
    # Position of every row inside its own sequence (shared by the batch tile).
    pos = jax.lax.broadcasted_iota(jnp.int32, (n, 1), 0) % s

    pooled = []
    off = 0
    for bank, k in enumerate(filter_sizes):
        # acc[i] = sum_j x[i + j] @ w_j for valid rows i < S - k + 1, accumulated
        # in an explicit VMEM scratch reused across the three filter banks so
        # only one (TB*S, F) f32 accumulator is ever live.
        acc_ref[...] = jnp.dot(x, w_ref[off], preferred_element_type=jnp.float32)
        for j in range(1, k):
            y = jnp.dot(x, w_ref[off + j], preferred_element_type=jnp.float32)
            # Aligned full-S matmul + XLU sublane rotate (== roll by -j).  Rows
            # that pick up data from the next sequence in the tile, or wrap
            # around the tile end (n = TB*S), only land at pos >= S - k + 1,
            # which the -inf mask below removes before the max.
            acc_ref[...] += pltpu.roll(y, n - j, 0)
        off += k
        conv = jnp.maximum(acc_ref[...] + cb_ref[bank][None, :], 0.0)   # bias + relu
        conv = jnp.where(pos < (s - k + 1), conv, -jnp.inf)   # mask invalid windows
        # TODO(synk): like the PyTorch reference, padded tokens are NOT masked
        # out of the max-pool (F.max_pool1d over the full sequence).
        # Reduce to (TB, F) immediately so the next bank reuses the scratch.
        pooled.append(jnp.max(conv.reshape(tb, s, n_filters), axis=1))

    feat = jnp.concatenate(pooled, axis=-1).astype(jnp.bfloat16)        # (TB, 3F)
    logits = jnp.dot(feat, fcw_ref[...], preferred_element_type=jnp.float32)
    o_ref[0] = (logits + fcb_ref[...]).astype(o_ref.dtype)


def conv_pool_fc(x, conv_ws, conv_bs, fc_w, fc_b, *, tb=None):
    """x: (B, S, H) f32; conv_ws[k]: (k, H, F); fc_w: (3F, 2) -> logits (B, 2)."""
    B, S, H = x.shape
    assert S >= max(FILTER_SIZES), (
        f"sequence length {S} shorter than the largest conv filter "
        f"{max(FILTER_SIZES)}; the max-pool would be -inf (the PyTorch "
        f"reference fails here too)")
    F = conv_ws[FILTER_SIZES[0]].shape[2]
    n_out = fc_w.shape[1]
    n_pad = _round_up(n_out, LANE)
    n_banks = len(FILTER_SIZES)
    k_total = sum(FILTER_SIZES)

    tb, b_pad = _pick_conv_batch_tile(B, S, tb if tb is not None else _CONV_TB_DEFAULT)
    n_tiles = b_pad // tb

    # Combined conv weights/biases: one resident tensor, x is read once per tile.
    w_all = jnp.concatenate([conv_ws[k] for k in FILTER_SIZES],
                            axis=0).astype(jnp.bfloat16)                # (9, H, F)
    cb = jnp.stack([conv_bs[k] for k in FILTER_SIZES], axis=0)          # (3, F)
    fcw = jnp.pad(fc_w, ((0, 0), (0, n_pad - n_out))).astype(jnp.bfloat16)
    fcb = jnp.pad(fc_b, (0, n_pad - n_out)).reshape(1, -1)

    x2d = x.reshape(B * S, H)                  # free leading-dim merge, no cast
    if b_pad != B:                             # rare: only when tb does not divide B
        x2d = jnp.pad(x2d, ((0, (b_pad - B) * S), (0, 0)))

    kern = functools.partial(_conv_pool_fc_kernel, filter_sizes=FILTER_SIZES,
                             seq_len=S, tb=tb, n_filters=F)
    out = pl.pallas_call(
        kern,
        # 3-D output so the block's last two dims always equal the full array
        # dims -> legal (lane-dense) stores for any tb (e.g. tb=1,2,4).
        out_shape=jax.ShapeDtypeStruct((n_tiles, tb, n_pad), jnp.float32),
        grid=(n_tiles,),
        in_specs=[
            pl.BlockSpec((tb * S, H), lambda i: (i, 0)),                # f32 batch tile
            _resident((k_total, H, F), lambda i: (0, 0, 0)),            # conv weights
            _resident((n_banks, F), lambda i: (0, 0)),                  # conv biases
            _resident((n_banks * F, n_pad), lambda i: (0, 0)),          # fc weight
            _resident((1, n_pad), lambda i: (0, 0)),                    # fc bias
        ],
        out_specs=pl.BlockSpec((1, tb, n_pad), lambda i: (i, 0, 0)),
        scratch_shapes=[pltpu.VMEM((tb * S, F), jnp.float32)],          # reused acc
        compiler_params=pltpu.CompilerParams(
            dimension_semantics=("parallel",),
            vmem_limit_bytes=_VMEM_LIMIT),
    )(x2d, w_all, cb, fcw, fcb)
    return out.reshape(b_pad, n_pad)[:B, :n_out]


# ----------------------------------------------------------------------------
# Parameters (deterministic synthetic init; mirrors XLTU.__init__ shapes)
# ----------------------------------------------------------------------------
def init_params(key, hidden, n_labels, num_filters):
    keys = jax.random.split(key, 12)

    def nrm(k, shape, std):
        return (std * jax.random.normal(k, shape, jnp.float32)).astype(jnp.float32)

    p = {}
    p["linear_1_w"] = nrm(keys[0], (hidden, hidden), 0.02)      # nn.Linear(H, H)
    p["linear_1_b"] = jnp.zeros((hidden,), jnp.float32)
    p["head1_w"] = nrm(keys[1], (hidden, n_labels), 0.04)       # classification_head_1
    p["head1_b"] = jnp.zeros((n_labels,), jnp.float32)
    p["linear_2_w"] = nrm(keys[2], (hidden, hidden), 0.02)      # nn.Linear(H, H)
    p["linear_2_b"] = jnp.zeros((hidden,), jnp.float32)
    p["head2_w"] = nrm(keys[3], (hidden, 2), 0.04)              # classification_head_2
    p["head2_b"] = jnp.zeros((2,), jnp.float32)
    p["conv_w"] = {k: nrm(keys[4 + i], (k, hidden, num_filters), 0.02)
                   for i, k in enumerate(FILTER_SIZES)}         # Conv2d(1, F, (k, H))
    p["conv_b"] = {k: jnp.zeros((num_filters,), jnp.float32) for k in FILTER_SIZES}
    p["fc_w"] = nrm(keys[8], (num_filters * len(FILTER_SIZES), 2), 0.04)  # fc
    p["fc_b"] = jnp.zeros((2,), jnp.float32)
    return p


# ----------------------------------------------------------------------------
# Forward (mirrors XLTU.forward; dropout is identity / eval mode)
# ----------------------------------------------------------------------------
def xltu_forward(params, transformer_seq_out, transformer_pooled_out,
                 labels=None, labels_mask=None, task=0,
                 n_labels=8, label_ignore_idx=0):
    # TODO(synk): XLMRobertaModel backbone is external; transformer_seq_out /
    # transformer_pooled_out stand in for self.model(inputs_ids)[0] / [1].
    B, S, H = transformer_seq_out.shape
    if task == 0:
        x2d = transformer_seq_out.reshape(B * S, H)
        logits = mlp_head(x2d, params["linear_1_w"], params["linear_1_b"],
                          params["head1_w"], params["head1_b"]).reshape(B, S, n_labels)
        if labels is not None:
            # TODO(synk): CRF loss term (loss1) has no reference implementation
            # in the snippet; only the masked CrossEntropy term (loss2) is computed.
            flat_logits = logits.reshape(-1, n_labels)
            flat_labels = labels.reshape(-1)
            active = (labels_mask.reshape(-1) == 1) & (flat_labels != label_ignore_idx)
            logp = jax.nn.log_softmax(flat_logits, axis=-1)
            nll = -jnp.take_along_axis(logp, flat_labels[:, None], axis=-1)[:, 0]
            loss2 = jnp.sum(nll * active) / jnp.maximum(jnp.sum(active), 1)
            preds = jnp.argmax(flat_logits, axis=-1)
            return loss2, logits, preds, flat_labels
        return logits

    elif task == 1:
        # classification_head_2 branch is computed (exactly as in the PyTorch
        # code, where its result is discarded); it is a few kFLOPs, so it stays
        # in plain XLA instead of paying a pallas_call launch.
        h2 = jnp.maximum(
            transformer_pooled_out @ params["linear_2_w"] + params["linear_2_b"], 0.0)
        _logits_1 = h2 @ params["head2_w"] + params["head2_b"]

        # Fused conv_and_pool over all filter sizes + fc in one Pallas kernel.
        logits_2 = conv_pool_fc(transformer_seq_out, params["conv_w"],
                                params["conv_b"], params["fc_w"], params["fc_b"])
        logits = logits_2
        if labels is not None:
            logits = logits.reshape(-1, 2)
            lab = labels.reshape(-1)
            logp = jax.nn.log_softmax(logits, axis=-1)
            loss = -jnp.mean(jnp.take_along_axis(logp, lab[:, None], axis=-1)[:, 0])
            return loss, logits, jnp.argmax(logits, axis=-1), lab
        return logits

    else:
        print("Invalid task. task has to be 0 or 1")


# ----------------------------------------------------------------------------
# Main
# ----------------------------------------------------------------------------
if __name__ == "__main__":
    B, S, H = 2, 16, 128          # small stand-in for (bsz, max_seq_len, hidden_size)
    n_labels = 8
    num_filters = 128             # small stand-in for 256

    key = jax.random.PRNGKey(0)
    kp, kx, kpool, klab, kmask, klab2 = jax.random.split(key, 6)

    params = init_params(kp, H, n_labels, num_filters)
    seq_out = jax.random.normal(kx, (B, S, H), jnp.float32)       # model(inputs_ids)[0]
    pooled_out = jax.random.normal(kpool, (B, H), jnp.float32)    # model(inputs_ids)[1]
    labels_seq = jax.random.randint(klab, (B, S), 0, n_labels)
    labels_mask = (jax.random.uniform(kmask, (B, S)) > 0.3).astype(jnp.int32)
    labels_bc = jax.random.randint(klab2, (B,), 0, 2)

    # Task 0: sequence labeling head
    loss0, logits0, preds0, lab0 = xltu_forward(
        params, seq_out, pooled_out, labels_seq, labels_mask, task=0,
        n_labels=n_labels)

    # Task 1: binary classification head (fused conv_and_pool + fc)
    loss1, logits1, preds1, lab1 = xltu_forward(
        params, seq_out, pooled_out, labels_bc, None, task=1, n_labels=n_labels)

    jax.block_until_ready((loss0, logits0, preds0, loss1, logits1, preds1))
    print("KERNEL_OK")
</pallas_src>

<mosaic_0001>
module attributes {stable_mosaic.version = 11 : i64} {
  func.func @k(%arg0: i32, %arg1: memref<8x128xf32, #tpu.memory_space<vmem>>, %arg2: memref<8x128xf32, #tpu.memory_space<vmem>>) attributes {dimension_semantics = [#tpu.dimension_semantics<arbitrary>], iteration_bounds = array<i64: 1>, scalar_prefetch = 0 : i64, scratch_operands = 0 : i64, tpu.core_type = #tpu.core_type<tc>, window_params = [{pipeline_mode = #tpu.pipeline_mode<synchronous>, transform_indices = @transform_0, window_bounds = array<i64: 8, 128>}, {pipeline_mode = #tpu.pipeline_mode<synchronous>, transform_indices = @transform_1, window_bounds = array<i64: 8, 128>}]} {
    %c0 = arith.constant 0 : index
    %c0_0 = arith.constant 0 : index
    %0 = vector.load %arg1[%c0, %c0_0] : memref<8x128xf32, #tpu.memory_space<vmem>>, vector<8x128xf32>
    %cst = arith.constant 1.000000e+00 : f32
    %1 = vector.broadcast %cst : f32 to vector<8x128xf32>
    %2 = arith.addf %0, %1 : vector<8x128xf32>
    %c0_1 = arith.constant 0 : index
    %c0_2 = arith.constant 0 : index
    %3 = vector.load %arg2[%c0_1, %c0_2] : memref<8x128xf32, #tpu.memory_space<vmem>>, vector<8x128xf32>
    tpu.vector_store %arg2[%c0_1, %c0_2], %2 {strides = array<i32>} : memref<8x128xf32, #tpu.memory_space<vmem>>, vector<8x128xf32>,
    return
  }
  func.func @transform_0(%arg0: i32) -> (i32, i32) {
    %c0_i32 = arith.constant 0 : i32
    %c0_i32_0 = arith.constant 0 : i32
    %c0_i32_1 = arith.constant 0 : i32
    return %c0_i32, %c0_i32_0 : i32, i32
  }
  func.func @transform_1(%arg0: i32) -> (i32, i32) {
    %c0_i32 = arith.constant 0 : i32
    %c0_i32_0 = arith.constant 0 : i32
    %c0_i32_1 = arith.constant 0 : i32
    return %c0_i32, %c0_i32_0 : i32, i32
  }
}

module attributes {stable_mosaic.version = 11 : i64} {
  func.func @_mlp_head_kernel(%arg0: i32, %arg1: memref<16x128xf32, #tpu.memory_space<vmem>>, %arg2: memref<128x128xbf16, #tpu.memory_space<vmem>>, %arg3: memref<1x128xf32, #tpu.memory_space<vmem>>, %arg4: memref<128x128xbf16, #tpu.memory_space<vmem>>, %arg5: memref<1x128xf32, #tpu.memory_space<vmem>>, %arg6: memref<16x128xbf16, #tpu.memory_space<vmem>>) attributes {dimension_semantics = [#tpu.dimension_semantics<parallel>], iteration_bounds = array<i64: 2>, scalar_prefetch = 0 : i64, scratch_operands = 0 : i64, tpu.core_type = #tpu.core_type<tc>, window_params = [{transform_indices = @transform_0, window_bounds = array<i64: 16, 128>}, {pipeline_mode = #tpu.pipeline_mode<synchronous>, transform_indices = @transform_1, window_bounds = array<i64: 128, 128>}, {pipeline_mode = #tpu.pipeline_mode<synchronous>, transform_indices = @transform_2, window_bounds = array<i64: 1, 128>}, {pipeline_mode = #tpu.pipeline_mode<synchronous>, transform_indices = @transform_3, window_bounds = array<i64: 128, 128>}, {pipeline_mode = #tpu.pipeline_mode<synchronous>, transform_indices = @transform_4, window_bounds = array<i64: 1, 128>}, {transform_indices = @transform_5, window_bounds = array<i64: 16, 128>}]} {
    %c0 = arith.constant 0 : index
    %c0_0 = arith.constant 0 : index
    %0 = vector.load %arg1[%c0, %c0_0] : memref<16x128xf32, #tpu.memory_space<vmem>>, vector<16x128xf32>
    %1 = arith.truncf %0 : vector<16x128xf32> to vector<16x128xbf16>
    %c0_1 = arith.constant 0 : index
    %c0_2 = arith.constant 0 : index
    %2 = vector.load %arg2[%c0_1, %c0_2] : memref<128x128xbf16, #tpu.memory_space<vmem>>, vector<128x128xbf16>
    %cst = arith.constant dense<0.000000e+00> : vector<16x128xf32>
    %3 = tpu.matmul %1, %2, %cst {dimension_numbers = #tpu.dot_dimension_numbers<[1], [0], [0], [1], [0, 0, 1, 1], [], []>} : vector<16x128xbf16>, vector<128x128xbf16>, vector<16x128xf32> -> vector<16x128xf32>
    %c0_3 = arith.constant 0 : index
    %c0_4 = arith.constant 0 : index
    %4 = vector.load %arg3[%c0_3, %c0_4] : memref<1x128xf32, #tpu.memory_space<vmem>>, vector<1x128xf32>
    %5 = vector.broadcast %4 : vector<1x128xf32> to vector<16x128xf32>
    %6 = arith.addf %3, %5 : vector<16x128xf32>
    %cst_5 = arith.constant 0.000000e+00 : f32
    %7 = vector.broadcast %cst_5 : f32 to vector<16x128xf32>
    %8 = arith.maximumf %6, %7 : vector<16x128xf32>
    %9 = arith.truncf %8 : vector<16x128xf32> to vector<16x128xbf16>
    %c0_6 = arith.constant 0 : index
    %c0_7 = arith.constant 0 : index
    %10 = vector.load %arg4[%c0_6, %c0_7] : memref<128x128xbf16, #tpu.memory_space<vmem>>, vector<128x128xbf16>
    %cst_8 = arith.constant dense<0.000000e+00> : vector<16x128xf32>
    %11 = tpu.matmul %9, %10, %cst_8 {dimension_numbers = #tpu.dot_dimension_numbers<[1], [0], [0], [1], [0, 0, 1, 1], [], []>} : vector<16x128xbf16>, vector<128x128xbf16>, vector<16x128xf32> -> vector<16x128xf32>
    %c0_9 = arith.constant 0 : index
    %c0_10 = arith.constant 0 : index
    %12 = vector.load %arg5[%c0_9, %c0_10] : memref<1x128xf32, #tpu.memory_space<vmem>>, vector<1x128xf32>
    %13 = vector.broadcast %12 : vector<1x128xf32> to vector<16x128xf32>
    %14 = arith.addf %11, %13 : vector<16x128xf32>
    %15 = arith.truncf %14 : vector<16x128xf32> to vector<16x128xbf16>
    %c0_11 = arith.constant 0 : index
    %c0_12 = arith.constant 0 : index
    %16 = vector.load %arg6[%c0_11, %c0_12] : memref<16x128xbf16, #tpu.memory_space<vmem>>, vector<16x128xbf16>
    tpu.vector_store %arg6[%c0_11, %c0_12], %15 {strides = array<i32>} : memref<16x128xbf16, #tpu.memory_space<vmem>>, vector<16x128xbf16>,
    return
  }
  func.func @transform_0(%arg0: i32) -> (i32, i32) {
    %c0_i32 = arith.constant 0 : i32
    %c0_i32_0 = arith.constant 0 : i32
    return %arg0, %c0_i32 : i32, i32
  }
  func.func @transform_1(%arg0: i32) -> (i32, i32) {
    %c0_i32 = arith.constant 0 : i32
    %c0_i32_0 = arith.constant 0 : i32
    %c0_i32_1 = arith.constant 0 : i32
    return %c0_i32, %c0_i32_0 : i32, i32
  }
  func.func @transform_2(%arg0: i32) -> (i32, i32) {
    %c0_i32 = arith.constant 0 : i32
    %c0_i32_0 = arith.constant 0 : i32
    %c0_i32_1 = arith.constant 0 : i32
    return %c0_i32, %c0_i32_0 : i32, i32
  }
  func.func @transform_3(%arg0: i32) -> (i32, i32) {
    %c0_i32 = arith.constant 0 : i32
    %c0_i32_0 = arith.constant 0 : i32
    %c0_i32_1 = arith.constant 0 : i32
    return %c0_i32, %c0_i32_0 : i32, i32
  }
  func.func @transform_4(%arg0: i32) -> (i32, i32) {
    %c0_i32 = arith.constant 0 : i32
    %c0_i32_0 = arith.constant 0 : i32
    %c0_i32_1 = arith.constant 0 : i32
    return %c0_i32, %c0_i32_0 : i32, i32
  }
  func.func @transform_5(%arg0: i32) -> (i32, i32) {
    %c0_i32 = arith.constant 0 : i32
    %c0_i32_0 = arith.constant 0 : i32
    return %arg0, %c0_i32 : i32, i32
  }
}

</mosaic_0001>

<bundles_post_ra>
// kernel: tpu_custom_call.1
= control target key start
LH: loop header
LB: loop body
LE: loop exit
PB: predicated region body
PF: predicated region fallthrough
CT: control target
= control target key end

     0   :  { %6 = vsyncpa [#allocation3], 0  ;;  %s125_s0 = inlined_call_operand.hbm [shape: f32[8,128], index: 0, kind: input, shape index: {}]   ;;  %s126_s1 = inlined_call_operand.hbm [shape: f32[8,128], index: 1, kind: output, shape index: {}]  }
   0x1   :  { %7 = vsyncpa [#allocation4], 0  ;;  %s89_s6 = smov [#allocation2]   ;;  %s41_s10 = scalar_lea.hbm %s125_s0, 128 }
   0x2   :  { %s14_s7 = sshll.u32 %s89_s6, 4  ;;  %p42_p0 = scmp.ne.s32.totalorder %s125_s0, %s41_s10  ;;  %s15_s7 = int_to_ptr.vmem [resolvable:$true] %s14_s7 }
   0x3   :  { %p45_p1 = scmp.lt.u32.totalorder %s41_s10, %s125_s0 }
   0x5   :  { %p47_p2 = pnand %p45_p1, %p42_p0 }
   0x7   :  { %50 = shalt.err (!%p47_p2)
}
   0x8   :  { %s51_s15 = scalar_lea.vmem %s15_s7, 128  ;;  %p56_p4 = scmp.lt.s32.totalorder %s15_s7, %s15_s7 }
   0x9   :  { %p52_p3 = scmp.ne.s32.totalorder %s15_s7, %s51_s15  ;;  %p57_p5 = scmp.lt.s32.totalorder %s51_s15, %s51_s15 }
   0xb   :  { %p58_p6 = por %p57_p5, %p56_p4 }
   0xd   :  { %p59_p7 = pnand %p58_p6, %p52_p3 }
   0xf   :  { %62 = shalt.err (!%p59_p7)
}
  0x10   :  { %17 = dma.hbm_to_vmem [thread:$0]  %s125_s0, 128, %s15_s7, [#allocation3]  }
  0x11   :  { %85 = dma.done.wait [#allocation3], 128  }
  0x12   :  { %86 = vsyncadd [#allocation3], 4294967168  ;;  %s90_s18 = smov [#allocation5]   ;;  %v21_v0 = vld [vmem:[#allocation2] sm:$0xff] }
  0x13   :  { %s30_s19 = sshll.u32 %s90_s18, 4  ;;  %v22_v1 = vadd.f32 1.0, %v21_v0  ;;  %s31_s19 = int_to_ptr.vmem [resolvable:$true] %s30_s19 }
  0x14   :  { %s63_s20 = scalar_lea.vmem %s31_s19, 128  ;;  %p68_p9 = scmp.lt.s32.totalorder %s31_s19, %s31_s19 }
  0x15   :  { %23 = vst [vmem:[#allocation5] sm:$0xff] %v22_v1  ;;  %p64_p8 = scmp.ne.s32.totalorder %s31_s19, %s63_s20  ;;  %p69_p10 = scmp.lt.s32.totalorder %s63_s20, %s63_s20 }
  0x17   :  { %p70_p11 = por %p69_p10, %p68_p9 }
  0x19   :  { %p71_p12 = pnand %p70_p11, %p64_p8 }
  0x1b   :  { %74 = shalt.err (!%p71_p12)
}
  0x1c   :  { %s75_s23 = scalar_lea.hbm %s126_s1, 128 }
  0x1d   :  { %p76_p13 = scmp.ne.s32.totalorder %s126_s1, %s75_s23  ;;  %p79_p0 = scmp.lt.u32.totalorder %s75_s23, %s126_s1 }
  0x1f   :  { %p81_p1 = pnand %p79_p0, %p76_p13 }
  0x21   :  { %84 = shalt.err (!%p81_p1)
}
  0x22   :  { %33 = dma.vmem_to_hbm [thread:$0]  %s31_s19, 128, %s126_s1, [#allocation4]  }
  0x23   :  { %87 = dma.done.wait [#allocation4], 128  }
  0x24   :  { %88 = vsyncadd [#allocation4], 4294967168 }
  0x25   :  { %37 = vsyncpa [#allocation3], 1 }
  0x26   :  { %38 = vsyncpa [#allocation4], 1 }

// kernel: tpu_custom_call.1
= control target key start
LH: loop header
LB: loop body
LE: loop exit
PB: predicated region body
PF: predicated region fallthrough
CT: control target
= control target key end

     0   :  { %10 = vsyncpa [#allocation3], 0  ;;  %s1429_s0 = inlined_call_operand.hbm [shape: f32[32,128], index: 0, kind: input, shape index: {}]   ;;  %s1430_s1 = inlined_call_operand.hbm [shape: bf16[128,128], index: 1, kind: input, shape index: {}]   ;;  %s1431_s2 = inlined_call_operand.hbm [shape: f32[1,128], index: 2, kind: input, shape index: {}]   ;;  %s1432_s3 = inlined_call_operand.hbm [shape: bf16[128,128], index: 3, kind: input, shape index: {}]   ;;  %s1433_s4 = inlined_call_operand.hbm [shape: f32[1,128], index: 4, kind: input, shape index: {}]   ;;  %s1434_s5 = inlined_call_operand.hbm [shape: bf16[32,128], index: 5, kind: output, shape index: {}]  }
   0x1   :  { %12 = vsyncpa [#allocation3 + $0x1], 0 }
   0x2   :  { %13 = vsyncpa [#allocation6], 0 }
   0x3   :  { %14 = vsyncpa [#allocation9], 0 }
   0x4   :  { %15 = vsyncpa [#allocation4], 0 }
   0x5   :  { %17 = vsyncpa [#allocation4 + $0x1], 0  ;;  %s1147_s18 = smov 0   ;;  %s1149_s19 = smov 0  }
   0x6   :  { %s1151_s20 = smov 0   ;;  %s1153_s21 = smov 0  }
   0x7 LB: > { %s1168_s22 = sadd.s32 4294967295, %s1101_s21   ;;  %s665_s23 = sadd.s32 4294967294, %s1101_s21   ;;  %s1101_s21 = sphi %s1153_s21, %s1457_s21   ;;  %s1097_s20 = sphi %s1151_s20, %s1456_s20   ;;  %s1093_s19 = sphi %s1149_s19, %s1455_s19   ;;  %s1089_s18 = sphi %s1147_s18, %s1454_s18  }
   0x8   : > { %p43_p0 = scmp.ne.s32.totalorder %s1093_s19, %s1089_s18  ;;  %p1435_p1 = scmp.eq.s32.totalorder %s1168_s22, 0 }
   0x9   : > { %p157_p3 = scmp.eq.s32.totalorder %s665_s23, 1  ;;  %p666_p5 = scmp.ge.s32.totalorder %s1101_s21, 1 }
   0xa   : > { %p1177_p4 = por %p1435_p1, %p43_p0  ;;  %p164_p7 = scmp.lt.s32.totalorder %s1101_s21, 3 }
   0xb   : > { %p1182_p6 = por %p157_p3, %p43_p0  ;;  %s1103_s27 = smov [#allocation5]  }
   0xc   : > { %s1438_s24 = scalar_select %p1177_p4, 1, 0 }
   0xd   : > { %s1439_s25 = scalar_select %p1182_p6, 1, 0 }
   0xe   : > { %p1187_p8 = pnand %p666_p5, %p164_p7  ;;  %s176_s28 = sshll.u32 %s1103_s27, 4  ;;  %s1191_s28 = int_to_ptr.vmem [resolvable:$true] %s176_s28 }
   0xf   : > { %s1104_s30 = smov [#allocation8]   ;;  %s1105_s7 = smov [#allocation7]  }
  0x10   : > { %s1440_s26 = scalar_select %p1187_p8, 1, 0 }
  0x11   : > { %p794_p9 = pneg %p1187_p8  ;;  %s200_s6 = sshll.u32 %s1104_s30, 4  ;;  %s1202_s6 = int_to_ptr.vmem [resolvable:$true] %s200_s6 }
  0x12   : > { %s1204_s8 = sshll.u32 %s1105_s7, 4  ;;  %s885_s11 = scalar_lea.hbm %s1430_s1, 1024  ;;  %s191_s8 = int_to_ptr.vmem [resolvable:$true] %s1204_s8 }
  0x13   : > { %p1198_p11 = pnand %p794_p9, %p1435_p1  ;;  %p886_p12 = scmp.ne.s32.totalorder %s1430_s1, %s885_s11 }
  0x14   : > { %p892_p5 = scmp.lt.u32.totalorder %s885_s11, %s1430_s1 }
  0x15   : > { %p1214_p13 = pneg %p1198_p11 }
  0x17   : > { %p888_p0 = pnand %p1214_p13, %p886_p12 }
  0x19   : > { %p889_p3 = pneg %p888_p0 }
  0x1b   : > { %p894_p7 = pnand %p892_p5, %p889_p3 }
  0x1d   : > { %897 = shalt.err (!%p894_p7)
}
  0x1e   : > { %s898_s17 = scalar_lea.vmem %s1191_s28, 1024  ;;  %p906_p2 = scmp.lt.s32.totalorder %s1191_s28, %s1191_s28 }
  0x1f   : > { %p899_p9 = scmp.ne.s32.totalorder %s1191_s28, %s898_s17  ;;  %p907_p6 = scmp.lt.s32.totalorder %s898_s17, %s898_s17 }
  0x21   : > { %p901_p10 = pnand %p899_p9, %p1214_p13  ;;  %p908_p12 = por %p907_p6, %p906_p2 }
  0x23   : > { %p902_p1 = pneg %p901_p10 }
  0x25   : > { %p909_p0 = pnand %p908_p12, %p902_p1 }
  0x27   : > { %912 = shalt.err (!%p909_p0)
}
  0x28   : > { %s1106_s23 = smov 64   ;;  %s1107_s27 = smov 4  }
  0x29   : > { %797 = dma.hbm_to_vmem [thread:$0]  (!%p1198_p11), %s1430_s1, 1024, %s1191_s28, [#allocation6], %s1106_s23, %s1106_s23, %s1107_s27  }
  0x2a   : > { %s913_s11 = scalar_lea.hbm %s1432_s3, 1024 }
  0x2b   : > { %p914_p2 = scmp.ne.s32.totalorder %s1432_s3, %s913_s11  ;;  %p920_p10 = scmp.lt.u32.totalorder %s913_s11, %s1432_s3 }
  0x2d   : > { %p916_p1 = pnand %p914_p2, %p1214_p13 }
  0x2f   : > { %p917_p6 = pneg %p916_p1 }
  0x31   : > { %p922_p3 = pnand %p920_p10, %p917_p6 }
  0x33   : > { %925 = shalt.err (!%p922_p3)
}
  0x34   : > { %s926_s28 = scalar_lea.vmem %s1202_s6, 1024  ;;  %p934_p12 = scmp.lt.s32.totalorder %s1202_s6, %s1202_s6 }
  0x35   : > { %p927_p5 = scmp.ne.s32.totalorder %s1202_s6, %s926_s28  ;;  %p935_p0 = scmp.lt.s32.totalorder %s926_s28, %s926_s28 }
  0x37   : > { %p929_p7 = pnand %p927_p5, %p1214_p13  ;;  %p936_p2 = por %p935_p0, %p934_p12 }
  0x39   : > { %p930_p9 = pneg %p929_p7 }
  0x3b   : > { %p937_p1 = pnand %p936_p2, %p930_p9 }
  0x3d   : > { %940 = shalt.err (!%p937_p1)
}
  0x3e   : > { %803 = dma.hbm_to_vmem [thread:$0]  (!%p1198_p11), %s1432_s3, 1024, %s1202_s6, [#allocation9], %s1106_s23, %s1106_s23, %s1107_s27  }
  0x3f   : > { %s941_s10 = scalar_lea.hbm %s1431_s2, 16 }
  0x40   : > { %p942_p6 = scmp.ne.s32.totalorder %s1431_s2, %s941_s10  ;;  %p948_p5 = scmp.lt.u32.totalorder %s941_s10, %s1431_s2 }
  0x42   : > { %p944_p10 = pnand %p942_p6, %p1214_p13 }
  0x44   : > { %p945_p3 = pneg %p944_p10 }
  0x46   : > { %p950_p7 = pnand %p948_p5, %p945_p3 }
  0x48   : > { %953 = shalt.err (!%p950_p7)
}
  0x49   : > { %s954_s16 = scalar_lea.vmem %s191_s8, 16  ;;  %s961_s6 = scalar_lea.vmem %s191_s8, 32 }
  0x4a   : > { %p955_p9 = scmp.ne.s32.totalorder %s191_s8, %s954_s16  ;;  %p962_p2 = scmp.lt.s32.totalorder %s191_s8, %s191_s8 }
  0x4b   : > { %p963_p1 = scmp.lt.s32.totalorder %s961_s6, %s954_s16 }
  0x4c   : > { %p957_p12 = pnand %p955_p9, %p1214_p13 }
  0x4d   : > { %p964_p4 = por %p963_p1, %p962_p2 }
  0x4e   : > { %p958_p0 = pneg %p957_p12 }
  0x50   : > { %p965_p8 = pnand %p964_p4, %p958_p0 }
  0x52   : > { %968 = shalt.err (!%p965_p8)
}
  0x53   : > { %800 = dma.hbm_to_vmem [thread:$0]  (!%p1198_p11), %s1431_s2, 16, %s191_s8, [#allocation6]  }
  0x54   : > { %s1108_s28 = smov [#allocation10]   ;;  %s969_s9 = scalar_lea.hbm %s1433_s4, 16 }
  0x55   : > { %s214_s17 = sshll.u32 %s1108_s28, 4  ;;  %p970_p6 = scmp.ne.s32.totalorder %s1433_s4, %s969_s9  ;;  %s215_s17 = int_to_ptr.vmem [resolvable:$true] %s214_s17 }
  0x56   : > { %p976_p10 = scmp.lt.u32.totalorder %s969_s9, %s1433_s4 }
  0x57   : > { %p972_p4 = pnand %p970_p6, %p1214_p13 }
  0x59   : > { %p973_p8 = pneg %p972_p4 }
  0x5b   : > { %p978_p3 = pnand %p976_p10, %p973_p8 }
  0x5d   : > { %981 = shalt.err (!%p978_p3)
}
  0x5e   : > { %s982_s8 = scalar_lea.vmem %s215_s17, 16  ;;  %s989_s15 = scalar_lea.vmem %s215_s17, 32 }
  0x5f   : > { %p983_p5 = scmp.ne.s32.totalorder %s215_s17, %s982_s8  ;;  %p990_p12 = scmp.lt.s32.totalorder %s215_s17, %s215_s17 }
  0x60   : > { %p991_p0 = scmp.lt.s32.totalorder %s989_s15, %s982_s8 }
  0x61   : > { %p985_p7 = pnand %p983_p5, %p1214_p13 }
  0x62   : > { %p992_p2 = por %p991_p0, %p990_p12 }
  0x63   : > { %p986_p9 = pneg %p985_p7 }
  0x65   : > { %p993_p1 = pnand %p992_p2, %p986_p9 }
  0x67   : > { %996 = shalt.err (!%p993_p1)
}
  0x68   : > { %806 = dma.hbm_to_vmem [thread:$0]  (!%p1198_p11), %s1433_s4, 16, %s215_s17, [#allocation9]  }
  0x69   : > { %s1296_s14 = sadd.s32 1, %s1101_s21   ;;  %s30_s23 = sadd.s32 1, %s1097_s20 }
  0x6a   : > { %s27_s29 = ssub.s32 %s1101_s21, %s1296_s14  ;;  %p37_p13 = scmp.ne.s32.totalorder %s1097_s20, %s1093_s19 }
  0x6b   : > { %p28_p6 = scmp.eq.s32.totalorder %s27_s29, 0  ;;  %p38_p4 = scmp.eq.s32.totalorder %s1101_s21, 0 }
  0x6c   : > { %p1443_p8 = scmp.eq.s32.totalorder %s1168_s22, 1  ;;  %p819_p3 = scmp.lt.s32.totalorder %s1101_s21, 2 }
  0x6d   : > { %s1312_s28 = scalar_select %p28_p6, %s1097_s20, %s30_s23  }
  0x6e   : > { %p1306_p10 = por %p1443_p8, %p37_p13  ;;  %p39_p5 = por %p38_p4, %p37_p13 }
  0x6f   : > { %s225_s30 = sand.u32 1, %s1097_s20   ;;  %s707_s17 = sshll.u32 %s1101_s21, 8 }
  0x70   : > { %s672_s7 = sshll.u32 %s225_s30, 4  ;;  %s1319_s11 = scalar_lea.hbm %s1429_s0, %s707_s17 }
  0x71   : > { %s229_s12 = scalar_lea.vmem [#allocation2], %s672_s7  ;;  %p1323_p11 = pnand %p819_p3, %p39_p5 }
  0x72   : > { %s236_s13 = sshll.u32 %s229_s12, 4  ;;  %s1327_s15 = scalar_lea.sflag [#allocation3], %s225_s30  ;;  %s1321_s13 = int_to_ptr.vmem [resolvable:$true] %s236_s13 }
  0x73   : > { %s997_s16 = scalar_lea.hbm %s1319_s11, 256  ;;  %p999_p9 = pneg %p1323_p11 }
  0x74   : > { %p998_p7 = scmp.ne.s32.totalorder %s1319_s11, %s997_s16  ;;  %s1002_s29 = scalar_lea.hbm %s1429_s0, 512 }
  0x75   : > { %p1003_p2 = scmp.lt.u32.totalorder %s1319_s11, %s1429_s0  ;;  %p1004_p1 = scmp.lt.u32.totalorder %s1002_s29, %s997_s16 }
  0x76   : > { %p1000_p12 = pnand %p999_p9, %p998_p7  ;;  %p1006_p6 = scmp.lt.u32.totalorder %s997_s16, %s1319_s11 }
  0x77   : > { %p1005_p13 = por %p1004_p1, %p1003_p2 }
  0x78   : > { %p1001_p0 = pneg %p1000_p12 }
  0x79   : > { %p1007_p4 = por %p1006_p6, %p1005_p13 }
  0x7b   : > { %p1008_p8 = pnand %p1007_p4, %p1001_p0 }
  0x7d   : > { %1011 = shalt.err (!%p1008_p8)
}
  0x7e   : > { %s1012_s30 = scalar_lea.vmem %s1321_s13, 256  ;;  %s1109_s9 = smov [#allocation2]  }
  0x7f   : > { %p1013_p3 = scmp.ne.s32.totalorder %s1321_s13, %s1012_s30  ;;  %s1017_s10 = sshll.u32 %s1109_s9, 4  ;;  %s1018_s10 = int_to_ptr.vmem [resolvable:$false] %s1017_s10 }
  0x80   : > { %s1019_s12 = scalar_lea.vmem %s1018_s10, 512  ;;  %p1020_p12 = scmp.lt.s32.totalorder %s1321_s13, %s1018_s10 }
  0x81   : > { %p1015_p5 = pnand %p1013_p3, %p999_p9  ;;  %p1021_p2 = scmp.lt.s32.totalorder %s1019_s12, %s1012_s30 }
  0x83   : > { %p1016_p7 = pneg %p1015_p5  ;;  %p1022_p1 = por %p1021_p2, %p1020_p12 }
  0x85   : > { %p1023_p13 = pnand %p1022_p1, %p1016_p7 }
  0x87   : > { %1026 = shalt.err (!%p1023_p13)
}
  0x88   : > { %s1110_s16 = smov 128   ;;  %s1111_s6 = smov 8  }
  0x89   : > { %810 = dma.hbm_to_vmem [thread:$0]  (!%p1323_p11), %s1319_s11, 256, %s1321_s13, %s1327_s15, %s1110_s16, %s1110_s16, %s1111_s6  }
  0x8a   : > { %p1446_p9 = scmp.ne.s32.totalorder %s1440_s26, 0 }
  0x8b   : > { %s1358_s23 = sand.u32 (!%p1446_p9), 1, %s1093_s19   ;;  %p1447_p0 = scmp.ne.s32.totalorder (!%p1446_p9), %s1438_s24, 0 }
  0x8c   : > { %248 = sbr.rel (%p1446_p9) target bundleno = 642 (0x282), region = 40  ;;  %s676_s29 = sshll.u32 (!%p1446_p9), %s1358_s23, 4 }
  0x8d   : > { %s251_s7 = scalar_lea.sflag (!%p1446_p9), [#allocation3], %s1358_s23  ;;  %s1362_s17 = scalar_lea.vmem (!%p1446_p9), [#allocation2], %s676_s29 }
  0x93   : > { %1072 = dma.done.wait (%p1447_p0), %s251_s7, 256  }
  0x94   : > { %1074 = vsyncadd (%p1447_p0), %s251_s7, 4294967040  ;;  %p1448_p11 = scmp.eq.s32.totalorder %s1168_s22, 0 }
  0x96   : > { %1076 = dma.done.wait (%p1448_p11), [#allocation6], 1040   ;;  %p1449_p6 = pmov %p1448_p11 }
  0x98   : > { %1078 = vsyncadd (%p1449_p6), [#allocation6], 4294966256  ;;  %p1450_p4 = pmov %p1449_p6 }
  0x9a   : > { %1080 = dma.done.wait (%p1450_p4), [#allocation9], 1040   ;;  %p1451_p8 = pmov %p1450_p4 }
  0x9b   : > { %v1112_v0 = vmov 0.0   ;;  %vm1113_vm0 = vmmov 0   ;;  %v869_v1 = vld [vmem:[#allocation5] sm:$0xff]   ;;  %v870_v2 = vld [vmem:[#allocation5 + $0x8] sm:$0xff]   ;;  %v871_v3 = vld [vmem:[#allocation5 + $0x10] sm:$0xff]   ;;  %s681_s24 = sshll.u32 %s1358_s23, 3 }
  0x9c   : > { %1082 = vsyncadd (%p1451_p8), [#allocation9], 4294966256  ;;  %734 = vmatprep.subr.bf16.mxu0 %v1112_v0  ;;  %750 = vmatprep.mubr.msk.bf16.mxu0 %vm1113_vm0, %v1112_v0  ;;  %v877_v4 = vld [vmem:[#allocation8] sm:$0xff]   ;;  %v872_v5 = vld [vmem:[#allocation5 + $0x18] sm:$0xff]   ;;  %s296_s26 = scalar_lea.vmem [#allocation11], %s681_s24  ;;  %s710_s13 = sshll.u32 %s1168_s22, 7 }
  0x9d   : > { %754 = vmatprep.subr.bf16.mxu1 %v1112_v0  ;;  %770 = vmatprep.mubr.msk.bf16.mxu1 %vm1113_vm0, %v1112_v0  ;;  %v878_v6 = vld [vmem:[#allocation8 + $0x8] sm:$0xff]   ;;  %v873_v7 = vld [vmem:[#allocation5 + $0x20] sm:$0xff]   ;;  %v879_v8 = vld [vmem:[#allocation8 + $0x10] sm:$0xff]   ;;  %s554_s11 = sshll.u32 %s296_s26, 4  ;;  %s1385_s30 = scalar_lea.hbm %s1434_s5, %s710_s13  ;;  %s1380_s11 = int_to_ptr.vmem [resolvable:$true] %s554_s11 }
  0x9e   : > { %735 = vmatpush3.bf16.msra.mxu0 %v869_v1  ;;  %755 = vmatpush3.bf16.msra.mxu1 %v877_v4  ;;  %v874_v9 = vld [vmem:[#allocation5 + $0x28] sm:$0xff]   ;;  %v880_v10 = vld [vmem:[#allocation8 + $0x18] sm:$0xff]   ;;  %v875_v11 = vld [vmem:[#allocation5 + $0x30] sm:$0xff]   ;;  %s541_s9 = scalar_lea.sflag [#allocation4], %s1358_s23  ;;  %s1027_s10 = scalar_lea.vmem %s1380_s11, 128 }
  0x9f   : > { %736 = vmatprep.subr.bf16.mxu0 %v1112_v0  ;;  %756 = vmatprep.subr.bf16.mxu1 %v1112_v0  ;;  %v881_v12 = vld [vmem:[#allocation8 + $0x20] sm:$0xff]   ;;  %v876_v13 = vld [vmem:[#allocation5 + $0x38] sm:$0xff]   ;;  %v882_v16 = vld [vmem:[#allocation8 + $0x28] sm:$0xff]   ;;  %p1028_p3 = scmp.ne.s32.totalorder %s1380_s11, %s1027_s10  ;;  %s1114_s22 = smov [#allocation11]  }
  0xa0   : > { %v300_v14 = vld [vmem:[%s1362_s17] sm:$0xff]  ;;  %v301_v15 = vld [vmem:[%s1362_s17 + $0x8] sm:$0xff]  ;;  %s1031_s12 = sshll.u32 %s1114_s22, 4  ;;  %s1032_s12 = int_to_ptr.vmem [resolvable:$false] %s1031_s12 }
  0xa1   : > { %v302_v17 = vpack.c.bf16 %v301_v15, %v300_v14  ;;  %v883_v18 = vld [vmem:[#allocation8 + $0x30] sm:$0xff]   ;;  %v884_v19 = vld [vmem:[#allocation8 + $0x38] sm:$0xff]   ;;  %v691_v30 = vld [vmem:[#allocation10] ss:$0 sm:$0xff]  ;;  %p1029_p5 = pnand %p1028_p3, %p1306_p10  ;;  %s1033_s16 = scalar_lea.vmem %s1032_s12, 256 }
  0xa2   : > { %737 = vmatpush3.bf16.msra.mxu0 %v870_v2  ;;  %757 = vmatpush3.bf16.msra.mxu1 %v878_v6  ;;  %v682_v20 = vld [vmem:[#allocation7] ss:$0 sm:$0xff]  ;;  %p1034_p12 = scmp.lt.s32.totalorder %s1380_s11, %s1032_s12  ;;  %p1035_p2 = scmp.lt.s32.totalorder %s1033_s16, %s1027_s10 }
  0xa3   : > { %738 = vmatprep.subr.bf16.mxu0 %v1112_v0  ;;  %758 = vmatprep.subr.bf16.mxu1 %v1112_v0  ;;  %p1030_p7 = pneg %p1029_p5 }
  0xa4   : > { %p1036_p1 = por %p1035_p2, %p1034_p12 }
  0xa6   : > { %739 = vmatpush3.bf16.msra.mxu0 %v871_v3  ;;  %759 = vmatpush3.bf16.msra.mxu1 %v879_v8  ;;  %p1037_p13 = pnand %p1036_p1, %p1030_p7 }
  0xa7   : > { %740 = vmatprep.subr.bf16.mxu0 %v1112_v0  ;;  %760 = vmatprep.subr.bf16.mxu1 %v1112_v0 }
  0xaa   : > { %741 = vmatpush3.bf16.msra.mxu0 %v872_v5  ;;  %761 = vmatpush3.bf16.msra.mxu1 %v880_v10 }
  0xab   : > { %742 = vmatprep.subr.bf16.mxu0 %v1112_v0  ;;  %762 = vmatprep.subr.bf16.mxu1 %v1112_v0 }
  0xae   : > { %743 = vmatpush3.bf16.msra.mxu0 %v873_v7  ;;  %763 = vmatpush3.bf16.msra.mxu1 %v881_v12 }
  0xaf   : > { %744 = vmatprep.subr.bf16.mxu0 %v1112_v0  ;;  %764 = vmatprep.subr.bf16.mxu1 %v1112_v0 }
  0xb2   : > { %745 = vmatpush3.bf16.msra.mxu0 %v874_v9  ;;  %765 = vmatpush3.bf16.msra.mxu1 %v882_v16 }
  0xb3   : > { %746 = vmatprep.subr.bf16.mxu0 %v1112_v0  ;;  %766 = vmatprep.subr.bf16.mxu1 %v1112_v0 }
  0xb6   : > { %747 = vmatpush3.bf16.msra.mxu0 %v875_v11  ;;  %767 = vmatpush3.bf16.msra.mxu1 %v883_v18 }
  0xb7   : > { %748 = vmatprep.subr.bf16.mxu0 %v1112_v0  ;;  %768 = vmatprep.subr.bf16.mxu1 %v1112_v0 }
  0xba   : > { %749 = vmatpush3.bf16.msra.mxu0 %v876_v13  ;;  %769 = vmatpush3.bf16.msra.mxu1 %v884_v19 }
  0xbd   : > { %751 = vmatmul.mubr.bf16.vlgmr.msra.gmra.mrb[0].mxu0 %v302_v17 }
 0x190   : > { %v408_v21 = vpop.f32.mrb[0].mxu0 }
 0x191   : > { %v409_v22 = vadd.f32 %v682_v20, %v408_v21  ;;  %v752_v23 = vpop.f32.mrb[1].mxu0 }
 0x192   : > { %v411_v24 = vpop.f32.mrb[2].mxu0 }
 0x193   : > { %v412_v25 = vadd.f32 %v682_v20, %v411_v24  ;;  %v753_v26 = vpop.f32.mrb[3].mxu0  ;;  %v415_v27 = vmax.f32 %v409_v22, 0.0 }
 0x195   : > { %v416_v28 = vmax.f32 %v412_v25, 0.0 }
 0x197   : > { %v417_v29 = vpack.c.bf16 %v416_v28, %v415_v27 }
 0x199   : > { %771 = vmatmul.mubr.bf16.vlgmr.msra.gmra.mrb[0].mxu1 %v417_v29 }
 0x26c   : > { %v523_v31 = vpop.f32.mrb[0].mxu1 }
 0x26d   : > { %v772_v32 = vpop.f32.mrb[1].mxu1  ;;  %v524_v34 = vadd.f32 %v691_v30, %v523_v31 }
 0x26e   : > { %v526_v33 = vpop.f32.mrb[2].mxu1 }
 0x26f   : > { %v527_v35 = vadd.f32 %v691_v30, %v526_v33  ;;  %v773_v36 = vpop.f32.mrb[3].mxu1 }
 0x271   : > { %v714_v37 = vpack.c.bf16 %v527_v35, %v524_v34 }
 0x273   : > { %715 = vst [vmem:[%s296_s26] sm:$0xff] %v714_v37  }
 0x274   : > { %1040 = shalt.err (!%p1037_p13)
}
 0x275   : > { %s1041_s6 = scalar_lea.hbm %s1385_s30, 128  ;;  %s1045_s17 = scalar_lea.hbm %s1434_s5, 256 }
 0x276   : > { %p1042_p9 = scmp.ne.s32.totalorder %s1385_s30, %s1041_s6  ;;  %p1046_p6 = scmp.lt.u32.totalorder %s1385_s30, %s1434_s5 }
 0x277   : > { %p1047_p4 = scmp.lt.u32.totalorder %s1045_s17, %s1041_s6  ;;  %p1049_p3 = scmp.lt.u32.totalorder %s1041_s6, %s1385_s30 }
 0x278   : > { %p1043_p0 = pnand %p1042_p9, %p1306_p10 }
 0x279   : > { %p1048_p8 = por %p1047_p4, %p1046_p6 }
 0x27a   : > { %p1044_p11 = pneg %p1043_p0 }
 0x27b   : > { %p1050_p5 = por %p1049_p3, %p1048_p8 }
 0x27d   : > { %p1051_p7 = pnand %p1050_p5, %p1044_p11 }
 0x27f   : > { %1054 = shalt.err (!%p1051_p7)
}
 0x280   : > { %s1115_s13 = smov 64   ;;  %s1116_s8 = smov 4  }
 0x281   : > { %792 = dma.vmem_to_hbm [thread:$0]  (%p1306_p10), %s1380_s11, 128, %s1385_s30, %s541_s9, %s1115_s13, %s1115_s13, %s1116_s8  }
 0x282 PF: > { %s569_s15 = sand.u32 1, %s1089_s18   ;;  %p1452_p12 = scmp.ne.s32.totalorder %s1439_s25, 0 }
 0x283   : > { %p1453_p2 = scmp.ge.s32.totalorder %s1101_s21, 2  ;;  %s570_s10 = scalar_lea.sflag [#allocation4], %s569_s15 }
 0x285   : > { %p812_p1 = pnand %p1453_p2, %p1452_p12 }
 0x287   : > { %1084 = dma.done.wait (!%p812_p1), %s570_s10, 128  }
 0x288   : > { %1086 = vsyncadd (!%p812_p1), %s570_s10, 4294967168  ;;  %p20_p13 = scmp.ge.s32.totalorder %s1296_s14, 4   ;;  %s1454_s18 = smov %s1093_s19 }
 0x289   : > { %s1455_s19 = smov %s1097_s20  ;;  %s1456_s20 = smov %s1312_s28 }
 0x28a   : > { %s1457_s21 = smov %s1296_s14  ;;  %22 = sbr.rel (!%p20_p13) target bundleno = 7 (0x7), region = 101 }
 0x291   :  { %575 = vsyncpa [#allocation3], 1 }
 0x292   :  { %577 = vsyncpa [#allocation3 + $0x1], 1 }
 0x293   :  { %578 = vsyncpa [#allocation6], 1 }
 0x294   :  { %579 = vsyncpa [#allocation9], 1 }
 0x295   :  { %580 = vsyncpa [#allocation4], 1 }
 0x296   :  { %582 = vsyncpa [#allocation4 + $0x1], 1 }

</bundles_post_ra>
